<compile_context>
chip_gen: v5e
topology: v5e:2x2
jax: 0.10.0
libtpu: 0.0.40
codegen_flags: <defaults>
</compile_context>

<pallas_src>
import jax
import jax.numpy as jnp
from jax.experimental import pallas as pl
from jax.experimental.pallas import tpu as pltpu


def _linear_relu_kernel(x_ref, wt_ref, b_ref, o_ref, acc_ref):
    # x_ref: (TM, TK)   wt_ref: (TK, TN)   b_ref: (1, TN)
    # o_ref: (TM, TN)   acc_ref: (TM, TN) f32 scratch
    k = pl.program_id(2)

    @pl.when(k == 0)
    def _():
        acc_ref[...] = jnp.zeros_like(acc_ref)

    acc_ref[...] += jnp.dot(
        x_ref[...], wt_ref[...], preferred_element_type=jnp.float32
    )

    @pl.when(k == pl.num_programs(2) - 1)
    def _():
        o_ref[...] = jnp.maximum(acc_ref[...] + b_ref[...], 0.0).astype(o_ref.dtype)


def _round_up(x, m):
    return ((x + m - 1) // m) * m


def _pick_tk(k, cap=512):
    """Largest multiple-of-128 K tile <= cap that divides k exactly; else full K."""
    if k <= cap:
        return k
    t = (cap // 128) * 128
    while t >= 128:
        if k % t == 0:
            return t
        t -= 128
    return k  # fall back: single full-K block (always numerically safe)


@jax.jit
def backward_pass_forward(x, weight, bias):
    """y = ReLU(x @ weight.T + bias), matching nn.Linear + nn.ReLU.

    x:      [B, input_size]            float32
    weight: [output_size, input_size]  (PyTorch convention)
    bias:   [output_size]
    """
    B, in_size = x.shape
    out_size = weight.shape[0]

    # --- lane-dense output: pad OUT to a multiple of 128 --------------------
    out_p = _round_up(out_size, 128)
    w_t = weight.T                                  # [in, out], one-time transpose
    if out_p != out_size:
        # zero W columns / zero bias -> padded output cols are ReLU(0)=0.
        w_t = jnp.pad(w_t, ((0, 0), (0, out_p - out_size)))
        bias = jnp.pad(bias, (0, out_p - out_size))
    b2d = bias.reshape(1, out_p)

    # --- tile selection ------------------------------------------------------
    TN = min(out_p, 512)                            # N tile (multiple of 128, or full)
    TK = _pick_tk(in_size, cap=512)                 # exact divisor of in_size

    budget = 32 * 1024 * 1024                       # pipeline budget, safe v5e..v7x
    fixed = 4 * (2 * TK * TN + 2 * TN)              # W tile + bias (double-buffered)
    per_row = 4 * (2 * TK + 3 * TN)                 # x(2x) + out(2x) + acc(1x) per row
    tm_cap = max(8, (((budget - fixed) // per_row) // 8) * 8)
    MAX_TM = 1024
    if B <= min(MAX_TM, tm_cap):
        TM = B                                      # single batch tile for small B
    else:
        TM = min(MAX_TM, tm_cap)

    grid = (pl.cdiv(B, TM), pl.cdiv(out_p, TN), pl.cdiv(in_size, TK))

    needed = fixed + 4 * TM * (2 * TK + 3 * TN)
    vmem_limit = int(min(max(needed + (8 << 20), 32 << 20), 48 << 20))

    cost = pl.CostEstimate(
        flops=2 * B * in_size * out_p,
        transcendentals=0,
        bytes_accessed=4 * (grid[1] * B * in_size        # x (re-read per N tile)
                            + grid[0] * in_size * out_p  # W (re-read per batch tile)
                            + grid[0] * out_p            # bias
                            + B * out_p),                # y
    )

    y = pl.pallas_call(
        _linear_relu_kernel,
        out_shape=jax.ShapeDtypeStruct((B, out_p), x.dtype),
        grid=grid,
        in_specs=[
            pl.BlockSpec((TM, TK), lambda i, j, k: (i, k)),   # x tile
            pl.BlockSpec((TK, TN), lambda i, j, k: (k, j)),   # W^T tile ([K, N])
            pl.BlockSpec((1, TN), lambda i, j, k: (0, j)),    # bias tile
        ],
        out_specs=pl.BlockSpec((TM, TN), lambda i, j, k: (i, j)),
        scratch_shapes=[pltpu.VMEM((TM, TN), jnp.float32)],
        compiler_params=pltpu.CompilerParams(
            dimension_semantics=("parallel", "parallel", "arbitrary"),
            vmem_limit_bytes=vmem_limit,
        ),
        cost_estimate=cost,
    )(x, w_t, b2d)

    if out_p != out_size:
        y = y[:, :out_size]
    return y


def _run_case(B, in_size, out_size, key):
    kx, kw, kb = jax.random.split(key, 3)
    x = jax.random.normal(kx, (B, in_size), dtype=jnp.float32)
    # Mimic nn.Linear init: uniform(-1/sqrt(in), 1/sqrt(in))
    bound = 1.0 / (in_size ** 0.5)
    weight = jax.random.uniform(kw, (out_size, in_size), minval=-bound,
                                maxval=bound, dtype=jnp.float32)
    bias = jax.random.uniform(kb, (out_size,), minval=-bound,
                              maxval=bound, dtype=jnp.float32)

    y = jax.block_until_ready(backward_pass_forward(x, weight, bias))

    y_ref = jnp.maximum(
        jnp.matmul(x, weight.T, precision=jax.lax.Precision.HIGHEST) + bias, 0.0)
    assert y.shape == (B, out_size)
    assert jnp.allclose(y, y_ref, atol=2e-3, rtol=2e-3), \
        f"mismatch for shape {(B, in_size, out_size)}"


if __name__ == "__main__":
    key = jax.random.PRNGKey(0)
    k1, k2, k3 = jax.random.split(key, 3)

    # Small shapes consistent with the module: single batch tile, lane-padded out.
    _run_case(256, 32, 64, k1)
    # Ragged multi-tile batch (no wrapper pad / row slice needed).
    _run_case(2000, 256, 384, k2)
    # N + K tiling with the f32 VMEM accumulator path.
    _run_case(512, 1024, 1024, k3)

    print("KERNEL_OK")
</pallas_src>

<mosaic_0001>
module attributes {stable_mosaic.version = 11 : i64} {
  func.func @_linear_relu_kernel(%arg0: i32, %arg1: i32, %arg2: i32, %arg3: memref<256x32xf32, #tpu.memory_space<vmem>>, %arg4: memref<32x128xf32, #tpu.memory_space<vmem>>, %arg5: memref<1x128xf32, #tpu.memory_space<vmem>>, %arg6: memref<256x128xf32, #tpu.memory_space<vmem>>, %arg7: memref<256x128xf32, #tpu.memory_space<vmem>>) attributes {dimension_semantics = [#tpu.dimension_semantics<parallel>, #tpu.dimension_semantics<parallel>, #tpu.dimension_semantics<arbitrary>], iteration_bounds = array<i64: 1, 1, 1>, scalar_prefetch = 0 : i64, scratch_operands = 1 : i64, tpu.core_type = #tpu.core_type<tc>, window_params = [{transform_indices = @transform_0, window_bounds = array<i64: 256, 32>}, {transform_indices = @transform_1, window_bounds = array<i64: 32, 128>}, {transform_indices = @transform_2, window_bounds = array<i64: 1, 128>}, {transform_indices = @transform_3, window_bounds = array<i64: 256, 128>}]} {
    %c0_i32 = arith.constant 0 : i32
    %0 = arith.cmpi eq, %arg2, %c0_i32 : i32
    %1 = arith.extui %0 : i1 to i32
    %c0_i32_0 = arith.constant 0 : i32
    %2 = arith.cmpi ne, %1, %c0_i32_0 : i32
    scf.if %2 {
      %cst_10 = arith.constant 0.000000e+00 : f32
      %12 = vector.broadcast %cst_10 : f32 to vector<256x128xf32>
      %c0_11 = arith.constant 0 : index
      %c0_12 = arith.constant 0 : index
      %13 = vector.load %arg7[%c0_11, %c0_12] : memref<256x128xf32, #tpu.memory_space<vmem>>, vector<256x128xf32>
      tpu.vector_store %arg7[%c0_11, %c0_12], %12 {strides = array<i32>} : memref<256x128xf32, #tpu.memory_space<vmem>>, vector<256x128xf32>,
    } else {
    }
    %c0 = arith.constant 0 : index
    %c0_1 = arith.constant 0 : index
    %3 = vector.load %arg7[%c0, %c0_1] : memref<256x128xf32, #tpu.memory_space<vmem>>, vector<256x128xf32>
    %c0_2 = arith.constant 0 : index
    %c0_3 = arith.constant 0 : index
    %4 = vector.load %arg3[%c0_2, %c0_3] : memref<256x32xf32, #tpu.memory_space<vmem>>, vector<256x32xf32>
    %c0_4 = arith.constant 0 : index
    %c0_5 = arith.constant 0 : index
    %5 = vector.load %arg4[%c0_4, %c0_5] : memref<32x128xf32, #tpu.memory_space<vmem>>, vector<32x128xf32>
    %cst = arith.constant dense<0.000000e+00> : vector<256x128xf32>
    %6 = tpu.matmul %4, %5, %cst {dimension_numbers = #tpu.dot_dimension_numbers<[1], [0], [0], [1], [0, 0, 1, 1], [], []>} : vector<256x32xf32>, vector<32x128xf32>, vector<256x128xf32> -> vector<256x128xf32>
    %7 = arith.addf %3, %6 : vector<256x128xf32>
    %c0_6 = arith.constant 0 : index
    %c0_7 = arith.constant 0 : index
    %8 = vector.load %arg7[%c0_6, %c0_7] : memref<256x128xf32, #tpu.memory_space<vmem>>, vector<256x128xf32>
    tpu.vector_store %arg7[%c0_6, %c0_7], %7 {strides = array<i32>} : memref<256x128xf32, #tpu.memory_space<vmem>>, vector<256x128xf32>,
    %c0_i32_8 = arith.constant 0 : i32
    %9 = arith.cmpi eq, %arg2, %c0_i32_8 : i32
    %10 = arith.extui %9 : i1 to i32
    %c0_i32_9 = arith.constant 0 : i32
    %11 = arith.cmpi ne, %10, %c0_i32_9 : i32
    scf.if %11 {
      %c0_10 = arith.constant 0 : index
      %c0_11 = arith.constant 0 : index
      %12 = vector.load %arg7[%c0_10, %c0_11] : memref<256x128xf32, #tpu.memory_space<vmem>>, vector<256x128xf32>
      %c0_12 = arith.constant 0 : index
      %c0_13 = arith.constant 0 : index
      %13 = vector.load %arg5[%c0_12, %c0_13] : memref<1x128xf32, #tpu.memory_space<vmem>>, vector<1x128xf32>
      %14 = vector.broadcast %13 : vector<1x128xf32> to vector<256x128xf32>
      %15 = arith.addf %12, %14 : vector<256x128xf32>
      %cst_14 = arith.constant 0.000000e+00 : f32
      %16 = vector.broadcast %cst_14 : f32 to vector<256x128xf32>
      %17 = arith.maximumf %15, %16 : vector<256x128xf32>
      %c0_15 = arith.constant 0 : index
      %c0_16 = arith.constant 0 : index
      %18 = vector.load %arg6[%c0_15, %c0_16] : memref<256x128xf32, #tpu.memory_space<vmem>>, vector<256x128xf32>
      tpu.vector_store %arg6[%c0_15, %c0_16], %17 {strides = array<i32>} : memref<256x128xf32, #tpu.memory_space<vmem>>, vector<256x128xf32>,
    } else {
    }
    return
  }
  func.func @transform_0(%arg0: i32, %arg1: i32, %arg2: i32) -> (i32, i32) {
    %c0_i32 = arith.constant 0 : i32
    return %arg0, %arg2 : i32, i32
  }
  func.func @transform_1(%arg0: i32, %arg1: i32, %arg2: i32) -> (i32, i32) {
    %c0_i32 = arith.constant 0 : i32
    return %arg2, %arg1 : i32, i32
  }
  func.func @transform_2(%arg0: i32, %arg1: i32, %arg2: i32) -> (i32, i32) {
    %c0_i32 = arith.constant 0 : i32
    %c0_i32_0 = arith.constant 0 : i32
    return %c0_i32, %arg1 : i32, i32
  }
  func.func @transform_3(%arg0: i32, %arg1: i32, %arg2: i32) -> (i32, i32) {
    %c0_i32 = arith.constant 0 : i32
    return %arg0, %arg1 : i32, i32
  }
}

</mosaic_0001>

<bundles_post_ra>
// kernel: backward_pass_forward.1
= control target key start
LH: loop header
LB: loop body
LE: loop exit
PB: predicated region body
PF: predicated region fallthrough
CT: control target
= control target key end

     0   :  { %vm118_vm0 = vcmask 261120   ;;  %s869_s1 = inlined_call_operand.vmem [shape: f32[32,128], index: 1, kind: input, shape index: {}]   ;;  %s870_s0 = inlined_call_operand.vmem [shape: f32[256,32], index: 0, kind: input, shape index: {}]   ;;  %s871_s2 = inlined_call_operand.vmem [shape: f32[1,128], index: 2, kind: input, shape index: {}]   ;;  %s872_s3 = inlined_call_operand.vmem [shape: f32[256,128], index: 3, kind: output, shape index: {}]  }
   0x1   :  { %v117_v0 = vld [vmem:[%s869_s1 + $0x18] sm:$0xff]  ;;  %v116_v1 = vld [vmem:[%s869_s1 + $0x10] sm:$0xff]  ;;  %v115_v2 = vld [vmem:[%s869_s1 + $0x8] sm:$0xff] }
   0x2   :  { %564 = vmatpush.msra.mxu2 %v117_v0  ;;  %565 = vmatpush.msra.mxu3 %v117_v0  ;;  %v114_v3 = vld [vmem:[%s869_s1] sm:$0xff]  ;;  %v99_v8 = vld [vmem:[%s870_s0 + $0x88] sm:$0xff]  ;;  %v100_v12 = vld [vmem:[%s870_s0 + $0x90] sm:$0xff] }
   0x3   :  { %227 = vmatpush.msra.mxu0 %v117_v0  ;;  %563 = vmatpush.msra.mxu1 %v117_v0  ;;  %v98_v4 = vld [vmem:[%s870_s0 + $0x80] sm:$0xff]  ;;  %v107_v9 = vld [vmem:[%s870_s0 + $0xc8] sm:$0xff]  ;;  %v108_v13 = vld [vmem:[%s870_s0 + $0xd0] sm:$0xff] }
   0x4   :  { %567 = vmatpush.msra.mxu2 %v116_v1  ;;  %568 = vmatpush.msra.mxu3 %v116_v1  ;;  %v106_v5 = vld [vmem:[%s870_s0 + $0xc0] sm:$0xff]  ;;  %v83_v10 = vld [vmem:[%s870_s0 + $0x8] sm:$0xff]  ;;  %v84_v14 = vld [vmem:[%s870_s0 + $0x10] sm:$0xff] }
   0x5   :  { %228 = vmatpush.msra.mxu0 %v116_v1  ;;  %566 = vmatpush.msra.mxu1 %v116_v1  ;;  %v82_v6 = vld [vmem:[%s870_s0] sm:$0xff]  ;;  %v91_v11 = vld [vmem:[%s870_s0 + $0x48] sm:$0xff]  ;;  %v92_v15 = vld [vmem:[%s870_s0 + $0x50] sm:$0xff] }
   0x6   :  { %570 = vmatpush.msra.mxu2 %v115_v2  ;;  %571 = vmatpush.msra.mxu3 %v115_v2  ;;  %v90_v7 = vld [vmem:[%s870_s0 + $0x40] sm:$0xff]  ;;  %v101_v16 = vld [vmem:[%s870_s0 + $0x98] sm:$0xff]  ;;  %v103_v24 = vld [vmem:[%s870_s0 + $0xa8] sm:$0xff] }
   0x7   :  { %229 = vmatpush.msra.mxu0 %v115_v2  ;;  %569 = vmatpush.msra.mxu1 %v115_v2  ;;  %v109_v17 = vld [vmem:[%s870_s0 + $0xd8] sm:$0xff]  ;;  %v102_v20 = vld [vmem:[%s870_s0 + $0xa0] sm:$0xff]  ;;  %v111_v25 = vld [vmem:[%s870_s0 + $0xe8] sm:$0xff] }
   0x8   :  { %573 = vmatpush.msra.mxu2 %v114_v3  ;;  %574 = vmatpush.msra.mxu3 %v114_v3  ;;  %v85_v18 = vld [vmem:[%s870_s0 + $0x18] sm:$0xff]  ;;  %v110_v21 = vld [vmem:[%s870_s0 + $0xe0] sm:$0xff]  ;;  %v87_v26 = vld [vmem:[%s870_s0 + $0x28] sm:$0xff] }
   0x9   :  { %547 = vmatmul.msk.f32.vlgmr.msra.gmra.mxu2 %vm118_vm0, %v98_v4  ;;  %555 = vmatmul.msk.f32.vlgmr.msra.gmra.mxu3 %vm118_vm0, %v106_v5  ;;  %v93_v19 = vld [vmem:[%s870_s0 + $0x58] sm:$0xff]  ;;  %v86_v22 = vld [vmem:[%s870_s0 + $0x20] sm:$0xff]  ;;  %v95_v27 = vld [vmem:[%s870_s0 + $0x68] sm:$0xff] }
   0xa   :  { %230 = vmatpush.msra.mxu0 %v114_v3  ;;  %572 = vmatpush.msra.mxu1 %v114_v3  ;;  %v94_v23 = vld [vmem:[%s870_s0 + $0x60] sm:$0xff]  ;;  %v104_v28 = vld [vmem:[%s870_s0 + $0xb0] sm:$0xff]  ;;  %v105_v32 = vld [vmem:[%s870_s0 + $0xb8] sm:$0xff] }
   0xb   :  { %531 = vmatmul.msk.f32.vlgmr.msra.gmra.mxu0 %vm118_vm0, %v82_v6  ;;  %539 = vmatmul.msk.f32.vlgmr.msra.gmra.mxu1 %vm118_vm0, %v90_v7  ;;  %v112_v29 = vld [vmem:[%s870_s0 + $0xf0] sm:$0xff]  ;;  %v113_v33 = vld [vmem:[%s870_s0 + $0xf8] sm:$0xff]  ;;  %v739_v36 = vld [vmem:[%s871_s2] ss:$0 sm:$0xff] }
   0xc   :  { %v88_v30 = vld [vmem:[%s870_s0 + $0x30] sm:$0xff]  ;;  %v89_v34 = vld [vmem:[%s870_s0 + $0x38] sm:$0xff] }
   0xd   :  { %v96_v31 = vld [vmem:[%s870_s0 + $0x70] sm:$0xff]  ;;  %v97_v35 = vld [vmem:[%s870_s0 + $0x78] sm:$0xff] }
  0x11   :  { %548 = vmatmul.msk.f32.gmra.mxu2 %vm118_vm0, %v99_v8  ;;  %556 = vmatmul.msk.f32.gmra.mxu3 %vm118_vm0, %v107_v9 }
  0x13   :  { %532 = vmatmul.msk.f32.gmra.mxu0 %vm118_vm0, %v83_v10  ;;  %540 = vmatmul.msk.f32.gmra.mxu1 %vm118_vm0, %v91_v11 }
  0x19   :  { %549 = vmatmul.msk.f32.gmra.mxu2 %vm118_vm0, %v100_v12  ;;  %557 = vmatmul.msk.f32.gmra.mxu3 %vm118_vm0, %v108_v13 }
  0x1b   :  { %533 = vmatmul.msk.f32.gmra.mxu0 %vm118_vm0, %v84_v14  ;;  %541 = vmatmul.msk.f32.gmra.mxu1 %vm118_vm0, %v92_v15 }
  0x21   :  { %550 = vmatmul.msk.f32.gmra.mxu2 %vm118_vm0, %v101_v16  ;;  %558 = vmatmul.msk.f32.gmra.mxu3 %vm118_vm0, %v109_v17 }
  0x23   :  { %534 = vmatmul.msk.f32.gmra.mxu0 %vm118_vm0, %v85_v18  ;;  %542 = vmatmul.msk.f32.gmra.mxu1 %vm118_vm0, %v93_v19 }
  0x29   :  { %551 = vmatmul.msk.f32.gmra.mxu2 %vm118_vm0, %v102_v20  ;;  %559 = vmatmul.msk.f32.gmra.mxu3 %vm118_vm0, %v110_v21 }
  0x2b   :  { %535 = vmatmul.msk.f32.gmra.mxu0 %vm118_vm0, %v86_v22  ;;  %543 = vmatmul.msk.f32.gmra.mxu1 %vm118_vm0, %v94_v23 }
  0x31   :  { %552 = vmatmul.msk.f32.gmra.mxu2 %vm118_vm0, %v103_v24  ;;  %560 = vmatmul.msk.f32.gmra.mxu3 %vm118_vm0, %v111_v25 }
  0x33   :  { %536 = vmatmul.msk.f32.gmra.mxu0 %vm118_vm0, %v87_v26  ;;  %544 = vmatmul.msk.f32.gmra.mxu1 %vm118_vm0, %v95_v27 }
  0x39   :  { %553 = vmatmul.msk.f32.gmra.mxu2 %vm118_vm0, %v104_v28  ;;  %561 = vmatmul.msk.f32.gmra.mxu3 %vm118_vm0, %v112_v29 }
  0x3b   :  { %537 = vmatmul.msk.f32.gmra.mxu0 %vm118_vm0, %v88_v30  ;;  %545 = vmatmul.msk.f32.gmra.mxu1 %vm118_vm0, %v96_v31 }
  0x41   :  { %554 = vmatmul.msk.f32.gmra.mxu2 %vm118_vm0, %v105_v32  ;;  %562 = vmatmul.msk.f32.gmra.mxu3 %vm118_vm0, %v113_v33 }
  0x43   :  { %538 = vmatmul.msk.f32.gmra.mxu0 %vm118_vm0, %v89_v34  ;;  %546 = vmatmul.msk.f32.gmra.mxu1 %vm118_vm0, %v97_v35 }
  0x88   :  { %v232_v37 = vpop.f32.mrf.mxu0  ;;  %v256_v38 = vpop.f32.mrf.mxu1 }
  0x89   :  { %v431_v39 = vadd.f32 %v739_v36, %v232_v37  ;;  %v439_v40 = vadd.f32 %v739_v36, %v256_v38 }
  0x8b   :  { %v463_v41 = vmax.f32 %v431_v39, 0.0  ;;  %v471_v42 = vmax.f32 %v439_v40, 0.0 }
  0x8c   :  { %v280_v43 = vpop.f32.mrf.mxu2  ;;  %v304_v44 = vpop.f32.mrf.mxu3 }
  0x8d   :  { %495 = vst [vmem:[%s872_s3] sm:$0xff] %v463_v41  ;;  %v447_v45 = vadd.f32 %v739_v36, %v280_v43  ;;  %v455_v46 = vadd.f32 %v739_v36, %v304_v44 }
  0x8e   :  { %503 = vst [vmem:[%s872_s3 + $0x40] sm:$0xff] %v471_v42 }
  0x8f   :  { %v479_v47 = vmax.f32 %v447_v45, 0.0  ;;  %v487_v48 = vmax.f32 %v455_v46, 0.0 }
  0x90   :  { %v235_v49 = vpop.f32.mrf.mxu0  ;;  %v259_v50 = vpop.f32.mrf.mxu1 }
  0x91   :  { %511 = vst [vmem:[%s872_s3 + $0x80] sm:$0xff] %v479_v47  ;;  %v432_v51 = vadd.f32 %v739_v36, %v235_v49  ;;  %v440_v52 = vadd.f32 %v739_v36, %v259_v50 }
  0x92   :  { %519 = vst [vmem:[%s872_s3 + $0xc0] sm:$0xff] %v487_v48 }
  0x93   :  { %v464_v53 = vmax.f32 %v432_v51, 0.0  ;;  %v472_v54 = vmax.f32 %v440_v52, 0.0 }
  0x94   :  { %v283_v55 = vpop.f32.mrf.mxu2  ;;  %v307_v56 = vpop.f32.mrf.mxu3 }
  0x95   :  { %496 = vst [vmem:[%s872_s3 + $0x8] sm:$0xff] %v464_v53  ;;  %v448_v57 = vadd.f32 %v739_v36, %v283_v55  ;;  %v456_v58 = vadd.f32 %v739_v36, %v307_v56 }
  0x96   :  { %504 = vst [vmem:[%s872_s3 + $0x48] sm:$0xff] %v472_v54 }
  0x97   :  { %v480_v59 = vmax.f32 %v448_v57, 0.0  ;;  %v488_v60 = vmax.f32 %v456_v58, 0.0 }
  0x98   :  { %v238_v61 = vpop.f32.mrf.mxu0  ;;  %v262_v62 = vpop.f32.mrf.mxu1 }
  0x99   :  { %512 = vst [vmem:[%s872_s3 + $0x88] sm:$0xff] %v480_v59  ;;  %v433_v63 = vadd.f32 %v739_v36, %v238_v61  ;;  %v441_v0 = vadd.f32 %v739_v36, %v262_v62 }
  0x9a   :  { %520 = vst [vmem:[%s872_s3 + $0xc8] sm:$0xff] %v488_v60 }
  0x9b   :  { %v465_v1 = vmax.f32 %v433_v63, 0.0  ;;  %v473_v2 = vmax.f32 %v441_v0, 0.0 }
  0x9c   :  { %v286_v3 = vpop.f32.mrf.mxu2  ;;  %v310_v4 = vpop.f32.mrf.mxu3 }
  0x9d   :  { %497 = vst [vmem:[%s872_s3 + $0x10] sm:$0xff] %v465_v1  ;;  %v449_v5 = vadd.f32 %v739_v36, %v286_v3  ;;  %v457_v6 = vadd.f32 %v739_v36, %v310_v4 }
  0x9e   :  { %505 = vst [vmem:[%s872_s3 + $0x50] sm:$0xff] %v473_v2 }
  0x9f   :  { %v481_v7 = vmax.f32 %v449_v5, 0.0  ;;  %v489_v8 = vmax.f32 %v457_v6, 0.0 }
  0xa0   :  { %v241_v9 = vpop.f32.mrf.mxu0  ;;  %v265_v10 = vpop.f32.mrf.mxu1 }
  0xa1   :  { %513 = vst [vmem:[%s872_s3 + $0x90] sm:$0xff] %v481_v7  ;;  %v434_v11 = vadd.f32 %v739_v36, %v241_v9  ;;  %v442_v12 = vadd.f32 %v739_v36, %v265_v10 }
  0xa2   :  { %521 = vst [vmem:[%s872_s3 + $0xd0] sm:$0xff] %v489_v8 }
  0xa3   :  { %v466_v13 = vmax.f32 %v434_v11, 0.0  ;;  %v474_v14 = vmax.f32 %v442_v12, 0.0 }
  0xa4   :  { %v289_v15 = vpop.f32.mrf.mxu2  ;;  %v313_v16 = vpop.f32.mrf.mxu3 }
  0xa5   :  { %498 = vst [vmem:[%s872_s3 + $0x18] sm:$0xff] %v466_v13  ;;  %v450_v17 = vadd.f32 %v739_v36, %v289_v15  ;;  %v458_v18 = vadd.f32 %v739_v36, %v313_v16 }
  0xa6   :  { %506 = vst [vmem:[%s872_s3 + $0x58] sm:$0xff] %v474_v14 }
  0xa7   :  { %v482_v19 = vmax.f32 %v450_v17, 0.0  ;;  %v490_v20 = vmax.f32 %v458_v18, 0.0 }
  0xa8   :  { %v244_v21 = vpop.f32.mrf.mxu0  ;;  %v268_v22 = vpop.f32.mrf.mxu1 }
  0xa9   :  { %514 = vst [vmem:[%s872_s3 + $0x98] sm:$0xff] %v482_v19  ;;  %v435_v23 = vadd.f32 %v739_v36, %v244_v21  ;;  %v443_v24 = vadd.f32 %v739_v36, %v268_v22 }
  0xaa   :  { %522 = vst [vmem:[%s872_s3 + $0xd8] sm:$0xff] %v490_v20 }
  0xab   :  { %v467_v25 = vmax.f32 %v435_v23, 0.0  ;;  %v475_v26 = vmax.f32 %v443_v24, 0.0 }
  0xac   :  { %v292_v27 = vpop.f32.mrf.mxu2  ;;  %v316_v28 = vpop.f32.mrf.mxu3 }
  0xad   :  { %499 = vst [vmem:[%s872_s3 + $0x20] sm:$0xff] %v467_v25  ;;  %v451_v29 = vadd.f32 %v739_v36, %v292_v27  ;;  %v459_v30 = vadd.f32 %v739_v36, %v316_v28 }
  0xae   :  { %507 = vst [vmem:[%s872_s3 + $0x60] sm:$0xff] %v475_v26 }
  0xaf   :  { %v483_v31 = vmax.f32 %v451_v29, 0.0  ;;  %v491_v32 = vmax.f32 %v459_v30, 0.0 }
  0xb0   :  { %v247_v33 = vpop.f32.mrf.mxu0  ;;  %v271_v34 = vpop.f32.mrf.mxu1 }
  0xb1   :  { %515 = vst [vmem:[%s872_s3 + $0xa0] sm:$0xff] %v483_v31  ;;  %v436_v35 = vadd.f32 %v739_v36, %v247_v33  ;;  %v444_v37 = vadd.f32 %v739_v36, %v271_v34 }
  0xb2   :  { %523 = vst [vmem:[%s872_s3 + $0xe0] sm:$0xff] %v491_v32 }
  0xb3   :  { %v468_v38 = vmax.f32 %v436_v35, 0.0  ;;  %v476_v39 = vmax.f32 %v444_v37, 0.0 }
  0xb4   :  { %v295_v40 = vpop.f32.mrf.mxu2  ;;  %v319_v41 = vpop.f32.mrf.mxu3 }
  0xb5   :  { %500 = vst [vmem:[%s872_s3 + $0x28] sm:$0xff] %v468_v38  ;;  %v452_v42 = vadd.f32 %v739_v36, %v295_v40  ;;  %v460_v43 = vadd.f32 %v739_v36, %v319_v41 }
  0xb6   :  { %508 = vst [vmem:[%s872_s3 + $0x68] sm:$0xff] %v476_v39 }
  0xb7   :  { %v484_v44 = vmax.f32 %v452_v42, 0.0  ;;  %v492_v45 = vmax.f32 %v460_v43, 0.0 }
  0xb8   :  { %v250_v46 = vpop.f32.mrf.mxu0  ;;  %v274_v47 = vpop.f32.mrf.mxu1 }
  0xb9   :  { %516 = vst [vmem:[%s872_s3 + $0xa8] sm:$0xff] %v484_v44  ;;  %v437_v48 = vadd.f32 %v739_v36, %v250_v46  ;;  %v445_v49 = vadd.f32 %v739_v36, %v274_v47 }
  0xba   :  { %524 = vst [vmem:[%s872_s3 + $0xe8] sm:$0xff] %v492_v45 }
  0xbb   :  { %v469_v50 = vmax.f32 %v437_v48, 0.0  ;;  %v477_v51 = vmax.f32 %v445_v49, 0.0 }
  0xbc   :  { %v298_v52 = vpop.f32.mrf.mxu2  ;;  %v322_v53 = vpop.f32.mrf.mxu3 }
  0xbd   :  { %501 = vst [vmem:[%s872_s3 + $0x30] sm:$0xff] %v469_v50  ;;  %v453_v54 = vadd.f32 %v739_v36, %v298_v52  ;;  %v461_v55 = vadd.f32 %v739_v36, %v322_v53 }
  0xbe   :  { %509 = vst [vmem:[%s872_s3 + $0x70] sm:$0xff] %v477_v51 }
  0xbf   :  { %v485_v56 = vmax.f32 %v453_v54, 0.0  ;;  %v493_v57 = vmax.f32 %v461_v55, 0.0 }
  0xc0   :  { %v253_v58 = vpop.f32.mrf.mxu0  ;;  %v277_v59 = vpop.f32.mrf.mxu1 }
  0xc1   :  { %517 = vst [vmem:[%s872_s3 + $0xb0] sm:$0xff] %v485_v56  ;;  %v438_v60 = vadd.f32 %v739_v36, %v253_v58  ;;  %v446_v61 = vadd.f32 %v739_v36, %v277_v59 }
  0xc2   :  { %525 = vst [vmem:[%s872_s3 + $0xf0] sm:$0xff] %v493_v57 }
  0xc3   :  { %v470_v62 = vmax.f32 %v438_v60, 0.0  ;;  %v478_v63 = vmax.f32 %v446_v61, 0.0 }
  0xc4   :  { %v301_v0 = vpop.f32.mrf.mxu2  ;;  %v325_v1 = vpop.f32.mrf.mxu3 }
  0xc5   :  { %502 = vst [vmem:[%s872_s3 + $0x38] sm:$0xff] %v470_v62  ;;  %v454_v2 = vadd.f32 %v739_v36, %v301_v0  ;;  %v462_v3 = vadd.f32 %v739_v36, %v325_v1 }
  0xc6   :  { %510 = vst [vmem:[%s872_s3 + $0x78] sm:$0xff] %v478_v63 }
  0xc7   :  { %v486_v4 = vmax.f32 %v454_v2, 0.0  ;;  %v494_v5 = vmax.f32 %v462_v3, 0.0 }
  0xc9   :  { %518 = vst [vmem:[%s872_s3 + $0xb8] sm:$0xff] %v486_v4 }
  0xca   :  { %526 = vst [vmem:[%s872_s3 + $0xf8] sm:$0xff] %v494_v5 }

</bundles_post_ra>
